<compile_context>
chip_gen: v7x
topology: tpu7x:2x2x1
jax: 0.10.0
libtpu: 0.0.40
codegen_flags: <defaults>
</compile_context>

<pallas_src>
import jax
import jax.numpy as jnp
from jax import lax
from jax.experimental import pallas as pl
from jax.experimental.pallas import tpu as pltpu


def _round_up(x, m):
    return ((x + m - 1) // m) * m


def _vmem_capacity_bytes():
    """Physical VMEM per core; conservative 64 MiB (v7x) fallback."""
    try:
        info = pltpu.get_tpu_info()
        cap = getattr(info, "vmem_capacity_bytes", None)
        if cap:
            return int(cap)
    except Exception:
        pass
    return 64 * 1024 * 1024


# --------------------------------------------------------------------------
# Kernels
# --------------------------------------------------------------------------
def _gconv_fullk_kernel(a_ref, x_ref, o_ref):
    # a_ref: (Kp, W)   whole (padded) adjacency — VMEM resident, DMA'd once
    # x_ref: (Kp, TL)  lane tile of the batch-folded activations, full K
    # o_ref: (W,  TL)
    # out[w, l] = sum_k A[k, w] * X2[k, l]   (contract dim 0 vs dim 0; no transpose)
    o_ref[...] = lax.dot_general(
        a_ref[...], x_ref[...],
        dimension_numbers=(((0,), (0,)), ((), ())),
        preferred_element_type=jnp.float32,
    ).astype(o_ref.dtype)


def _gconv_ktiled_kernel(a_ref, x_ref, o_ref, acc_ref):
    # Fallback for very large V: K-tiled reduction with a resident f32 accumulator.
    # a_ref: (TK, W), x_ref: (TK, TL), o_ref/acc_ref: (W, TL)
    @pl.when(pl.program_id(1) == 0)
    def _():
        acc_ref[...] = jnp.zeros_like(acc_ref)

    acc_ref[...] += lax.dot_general(
        a_ref[...], x_ref[...],
        dimension_numbers=(((0,), (0,)), ((), ())),
        preferred_element_type=jnp.float32,
    )

    @pl.when(pl.program_id(1) == pl.num_programs(1) - 1)
    def _():
        o_ref[...] = acc_ref[...].astype(o_ref.dtype)


# --------------------------------------------------------------------------
# Folded-layout entry point (reusable across multiple supports / hops)
# --------------------------------------------------------------------------
def _gconv_hyper_folded(x2, A, out_dtype):
    """x2: (V, L) with L = N*C,  A: (V, W)  ->  (W, L) = A^T @ x2."""
    V, L = x2.shape
    V2, W = A.shape
    assert V == V2, f"incompatible shapes: x2 {x2.shape}, A {A.shape}"

    x_bytes = jnp.dtype(x2.dtype).itemsize
    a_bytes = jnp.dtype(A.dtype).itemsize
    o_bytes = jnp.dtype(out_dtype).itemsize
    sub_align = max(8, 32 // x_bytes)          # f32: 8, bf16: 16, int8/fp8: 32
    Kp = _round_up(V, sub_align)

    # Generation-aware VMEM sizing (96 MiB-ish on v5e/v6e, ~48 MiB on v7x).
    vmem_limit = min(_vmem_capacity_bytes() * 3 // 4, 100 * 1024 * 1024)
    buf_budget = int(vmem_limit * 0.85)

    # ---------------- primary path: single full-K block ----------------------
    fixed = 2 * Kp * W * a_bytes                        # A (count double-buffer, worst case)
    per_lane = 2 * Kp * x_bytes + 2 * W * o_bytes       # X2 tile + out tile (double-buffered)
    tl_budget = (buf_budget - fixed) // per_lane if buf_budget > fixed else 0

    if tl_budget >= 128:
        TL = min((tl_budget // 128) * 128, 2048, _round_up(L, 128))
        TL = max(TL, 128)
        # >= 2 lane tiles when L allows, so v7x's two TensorCores both get work.
        if _round_up(L, TL) // TL < 2 and L >= 256:
            TL = min(TL, _round_up(-(-L // 2), 128))
        Lp = _round_up(L, TL)

        x2p = x2
        if Kp != V or Lp != L:
            x2p = jnp.pad(x2, ((0, Kp - V), (0, Lp - L)))
        a_p = jnp.pad(A, ((0, Kp - V), (0, 0))) if Kp != V else A

        out2 = pl.pallas_call(
            _gconv_fullk_kernel,
            out_shape=jax.ShapeDtypeStruct((W, Lp), out_dtype),
            grid_spec=pltpu.PrefetchScalarGridSpec(
                num_scalar_prefetch=0,
                grid=(Lp // TL,),
                in_specs=[
                    pl.BlockSpec((Kp, W), lambda l: (0, 0)),    # A: constant block -> 1 DMA
                    pl.BlockSpec((Kp, TL), lambda l: (0, l)),   # X2 lane tile, full K
                ],
                out_specs=pl.BlockSpec((W, TL), lambda l: (0, l)),
            ),
            compiler_params=pltpu.CompilerParams(
                dimension_semantics=("parallel",),
                vmem_limit_bytes=vmem_limit,
            ),
        )(a_p, x2p)
        return out2[:, :L]

    # ---------------- fallback: very large V, tile the reduction axis --------
    # TODO(synk): for extreme W (output/accumulator alone exceeding VMEM) a third
    # grid axis tiling W would be needed; not implemented here.
    TL = 256
    fixed_o = 2 * W * TL * o_bytes + W * TL * 4
    per_k = 2 * W * a_bytes + 2 * TL * x_bytes
    tk_budget = (buf_budget - fixed_o) // per_k if buf_budget > fixed_o else 0
    TK = max(sub_align, min((tk_budget // sub_align) * sub_align, 2048))
    TK = min(TK, _round_up(V, sub_align))

    Kp2 = _round_up(V, TK)
    Lp = _round_up(L, TL)
    x2p = x2
    if Kp2 != V or Lp != L:
        x2p = jnp.pad(x2, ((0, Kp2 - V), (0, Lp - L)))
    a_p = jnp.pad(A, ((0, Kp2 - V), (0, 0))) if Kp2 != V else A

    out2 = pl.pallas_call(
        _gconv_ktiled_kernel,
        out_shape=jax.ShapeDtypeStruct((W, Lp), out_dtype),
        grid_spec=pltpu.PrefetchScalarGridSpec(
            num_scalar_prefetch=0,
            grid=(Lp // TL, Kp2 // TK),
            in_specs=[
                pl.BlockSpec((TK, W), lambda l, k: (k, 0)),
                pl.BlockSpec((TK, TL), lambda l, k: (k, l)),
            ],
            out_specs=pl.BlockSpec((W, TL), lambda l, k: (0, l)),
            scratch_shapes=[pltpu.VMEM((W, TL), jnp.float32)],
        ),
        compiler_params=pltpu.CompilerParams(
            dimension_semantics=("parallel", "arbitrary"),
            vmem_limit_bytes=vmem_limit,
        ),
    )(a_p, x2p)
    return out2[:, :L]


# --------------------------------------------------------------------------
# Public wrapper (matches torch.einsum('nvc,vw->nwc'))
# --------------------------------------------------------------------------
def gconv_hyper(x, A):
    """x: (N, V, C), A: (V, W) -> (N, W, C)."""
    N, V, C = x.shape
    V2, W = A.shape
    assert V == V2, f"incompatible shapes: x {x.shape}, A {A.shape}"
    out_dtype = x.dtype
    A = A.astype(x.dtype)

    # Fold the batch into the lane axis (layout plumbing, done once).  Callers
    # that apply several A's / hops to the same x should fold once and call
    # _gconv_hyper_folded repeatedly to amortize this relayout.
    x2 = jnp.transpose(x, (1, 0, 2)).reshape(V, N * C)
    out2 = _gconv_hyper_folded(x2, A, out_dtype)        # (W, N*C)
    return out2.reshape(W, N, C).transpose(1, 0, 2)     # (N, W, C)


if __name__ == "__main__":
    key = jax.random.PRNGKey(0)
    run = jax.jit(gconv_hyper)

    # Small demo shapes: batch N=2, nodes V=W=16, channels C=32.
    kx, ka = jax.random.split(key)
    N, V, W, C = 2, 16, 16, 32
    x = jax.random.normal(kx, (N, V, C), dtype=jnp.float32)
    A = jax.random.normal(ka, (V, W), dtype=jnp.float32)
    out = jax.block_until_ready(run(x, A))
    ref = jnp.einsum("nvc,vw->nwc", x, A, precision=lax.Precision.HIGHEST)
    assert out.shape == (N, W, C)
    assert jnp.allclose(out, ref, atol=1e-3, rtol=1e-3), "mismatch vs reference (small)"

    # Medium shapes to exercise lane tiling + padding (>=2 lane tiles, full-K path).
    kx2, ka2 = jax.random.split(ka)
    N2, Vm, Wm, Cm = 8, 600, 600, 96
    x_m = jax.random.normal(kx2, (N2, Vm, Cm), dtype=jnp.float32)
    A_m = jax.random.normal(ka2, (Vm, Wm), dtype=jnp.float32)
    out_m = jax.block_until_ready(run(x_m, A_m))
    ref_m = jnp.einsum("nvc,vw->nwc", x_m, A_m, precision=lax.Precision.HIGHEST)
    assert out_m.shape == (N2, Wm, Cm)
    assert jnp.allclose(out_m, ref_m, atol=5e-3, rtol=5e-3), "mismatch vs reference (medium)"

    print("KERNEL_OK")
</pallas_src>

<mosaic_0001>
module attributes {stable_mosaic.version = 11 : i64} {
  func.func @_gconv_fullk_kernel(%arg0: i32, %arg1: memref<16x16xf32, #tpu.memory_space<vmem>>, %arg2: memref<16x128xf32, #tpu.memory_space<vmem>>, %arg3: memref<16x128xf32, #tpu.memory_space<vmem>>) attributes {dimension_semantics = [#tpu.dimension_semantics<parallel>], iteration_bounds = array<i64: 1>, scalar_prefetch = 0 : i64, scratch_operands = 0 : i64, tpu.core_type = #tpu.core_type<tc>, window_params = [{pipeline_mode = #tpu.pipeline_mode<synchronous>, transform_indices = @transform_0, window_bounds = array<i64: 16, 16>}, {transform_indices = @transform_1, window_bounds = array<i64: 16, 128>}, {transform_indices = @transform_2, window_bounds = array<i64: 16, 128>}]} {
    %c0 = arith.constant 0 : index
    %c0_0 = arith.constant 0 : index
    %0 = vector.load %arg1[%c0, %c0_0] : memref<16x16xf32, #tpu.memory_space<vmem>>, vector<16x16xf32>
    %c0_1 = arith.constant 0 : index
    %c0_2 = arith.constant 0 : index
    %1 = vector.load %arg2[%c0_1, %c0_2] : memref<16x128xf32, #tpu.memory_space<vmem>>, vector<16x128xf32>
    %cst = arith.constant dense<0.000000e+00> : vector<16x128xf32>
    %2 = tpu.matmul %0, %1, %cst {dimension_numbers = #tpu.dot_dimension_numbers<[0], [0], [1], [1], [0, 1, 1, 1], [], []>} : vector<16x16xf32>, vector<16x128xf32>, vector<16x128xf32> -> vector<16x128xf32>
    %c0_3 = arith.constant 0 : index
    %c0_4 = arith.constant 0 : index
    %3 = vector.load %arg3[%c0_3, %c0_4] : memref<16x128xf32, #tpu.memory_space<vmem>>, vector<16x128xf32>
    tpu.vector_store %arg3[%c0_3, %c0_4], %2 {strides = array<i32>} : memref<16x128xf32, #tpu.memory_space<vmem>>, vector<16x128xf32>,
    return
  }
  func.func @transform_0(%arg0: i32) -> (i32, i32) {
    %c0_i32 = arith.constant 0 : i32
    %c0_i32_0 = arith.constant 0 : i32
    %c0_i32_1 = arith.constant 0 : i32
    return %c0_i32, %c0_i32_0 : i32, i32
  }
  func.func @transform_1(%arg0: i32) -> (i32, i32) {
    %c0_i32 = arith.constant 0 : i32
    %c0_i32_0 = arith.constant 0 : i32
    return %c0_i32, %arg0 : i32, i32
  }
  func.func @transform_2(%arg0: i32) -> (i32, i32) {
    %c0_i32 = arith.constant 0 : i32
    %c0_i32_0 = arith.constant 0 : i32
    return %c0_i32, %arg0 : i32, i32
  }
}

</mosaic_0001>

<bundles_post_ra>
// kernel: gconv_hyper.1
= control target key start
LH: loop header
LB: loop body
LE: loop exit
PB: predicated region body
PF: predicated region fallthrough
CT: control target
= control target key end

     0   :  { %vm47_vm0 = vcmask 130048   ;;  %s186_s0 = inlined_call_operand.vmem [shape: f32[16,16], index: 0, kind: input, shape index: {}]   ;;  %s187_s1 = inlined_call_operand.vmem [shape: f32[16,128], index: 1, kind: input, shape index: {}]   ;;  %s188_s2 = inlined_call_operand.vmem [shape: f32[16,128], index: 2, kind: output, shape index: {}]  }
   0x1   :  { %v11_v0 = vld [vmem:[%s186_s0] sm:$0xff]  ;;  %v14_v2 = vld [vmem:[%s187_s1 + $0x8] sm:$0xff] }
   0x2   :  { %v13_v1 = vld [vmem:[%s187_s1] sm:$0xff]  ;;  %15 = vxpose.xlu0.b32.start [1/2] (short) (narrow) %v11_v0, 16  ;;  %v12_v3 = vld [vmem:[%s186_s0 + $0x8] sm:$0xff] }
   0x3   :  { %v148_v4 = vpack.c.bf16 %v14_v2, %v13_v1 }
   0x5   :  { %149 = vmatprep.subr.bf16.mxu0 %v148_v4 }
   0x6   :  { %16 = vxpose.xlu0.b32.end [2/2] (short) (narrow) %v12_v3, 16  ;;  %151 = vmatpush3.bf16.msra.mxu0 %v148_v4 }
  0x82   :  { %v31_v5 = vpop.trf.xlu0 }
  0x83   :  { %145 = vmatprep.mubr.msk.f32.mxu0 %vm47_vm0, %v31_v5 }
  0x86   :  { %v32_v6 = vpop.trf.xlu0 }
  0x87   :  { %146 = vmatmul.mubr.msk.f32.vlgmr.msra.gmra.mrb[0].mxu0 %vm47_vm0, %v32_v6 }
 0x15a   :  { %v147_v7 = vpop.f32.mrb[0].mxu0 }
 0x15b   :  { %130 = vst [vmem:[%s188_s2 + $0x8] sm:$0xff] %v147_v7  ;;  %v120_v8 = vpop.f32.mrb[1].mxu0 }
 0x15c   :  { %129 = vst [vmem:[%s188_s2] sm:$0xff] %v120_v8 }

</bundles_post_ra>
